<compile_context>
chip_gen: v5e
topology: v5e:2x2
jax: 0.10.0
libtpu: 0.0.40
codegen_flags: <defaults>
</compile_context>

<pallas_src>
import jax
import jax.numpy as jnp
from jax import lax
from jax.experimental import pallas as pl
from jax.experimental.pallas import tpu as pltpu


def _pooler_kernel(x_ref, w_ref, b_ref, o_ref):
    # x_ref: (tb, K)   first-token activations for this batch tile
    # w_ref: (tn, K)   dense weight tile in PyTorch (out, in) layout
    # b_ref: (1, tn)   dense bias tile
    # o_ref: (tb, tn)
    y = lax.dot_general(
        x_ref[...], w_ref[...],
        dimension_numbers=(((1,), (1,)), ((), ())),     # x @ w.T on the MXU
        preferred_element_type=jnp.float32,
    )
    y = y + b_ref[...].astype(jnp.float32)
    o_ref[...] = jnp.tanh(y).astype(o_ref.dtype)        # tanh rides the (idle) EUP slot


def _pick_tile(dim, align, max_tile):
    """Largest multiple of `align` that divides `dim` and is <= max_tile.
    Falls back to the full dim (always a legal block) if dim isn't aligned."""
    if dim % align != 0:
        return dim
    t = min(dim, max_tile)
    t -= t % align
    while dim % t != 0:
        t -= align
    return t


def bert_pooler(hidden_states, weight, bias):
    """hidden_states: (B, S, H); weight: (H_out, H_in) PyTorch layout; bias: (H_out,)."""
    B, S, H = hidden_states.shape
    H_out, H_in = weight.shape
    assert H_in == H and H_out == H and bias.shape == (H,)

    # Fold the first-token slice into the BlockSpec: a row-major reshape is a free
    # bitcast, and the x block then covers columns [0, H) of each (S*H)-wide row.
    if H % 128 == 0 or S == 1:
        x2d = hidden_states.reshape(B, S * H)
    else:
        # Unaligned hidden size: the block's lane dim wouldn't be 128-aligned, so
        # fall back to an explicit slice (only hit for non-hw-friendly H).
        x2d = hidden_states[:, 0, :]
    b2d = bias.reshape(1, H_out)

    tb = _pick_tile(B, 8, 256)          # batch tile (sublane-aligned)
    tn = _pick_tile(H_out, 128, 512)    # output-feature tile (lane-aligned, unmasked stores)
    # N outer, batch inner: the weight tile's block index is constant along the inner
    # axis, so Pallas keeps it resident and only streams the small activation tiles.
    grid = (pl.cdiv(H_out, tn), pl.cdiv(B, tb))

    out = pl.pallas_call(
        _pooler_kernel,
        out_shape=jax.ShapeDtypeStruct((B, H_out), hidden_states.dtype),
        grid=grid,
        in_specs=[
            pl.BlockSpec((tb, H_in), lambda j, i: (i, 0)),   # x: first-token rows, full K
            pl.BlockSpec((tn, H_in), lambda j, i: (j, 0)),   # w: resident across batch axis
            pl.BlockSpec((1, tn),    lambda j, i: (0, j)),   # bias
        ],
        out_specs=pl.BlockSpec((tb, tn), lambda j, i: (i, j)),
        compiler_params=pltpu.CompilerParams(
            dimension_semantics=("parallel", "parallel")),   # megacore-shardable on v7x
    )(x2d, weight, b2d)
    return out


def _reference(hidden_states, weight, bias):
    first_token = hidden_states[:, 0, :]
    return jnp.tanh(first_token @ weight.T + bias)


if __name__ == "__main__":
    key = jax.random.PRNGKey(0)
    k1, k2, k3 = jax.random.split(key, 3)

    # Small but hardware-aligned shapes: batch=8, seq=8, hidden=128.
    B, S, H = 8, 8, 128

    hidden_states = jax.random.normal(k1, (B, S, H), dtype=jnp.float32)
    # Deterministic "nn.Linear(H, H)" parameters in PyTorch (out, in) layout.
    weight = jax.random.normal(k2, (H, H), dtype=jnp.float32) * 0.02
    bias = jax.random.normal(k3, (H,), dtype=jnp.float32) * 0.02

    out = bert_pooler(hidden_states, weight, bias)
    out = jax.block_until_ready(out)

    ref = _reference(hidden_states, weight, bias)
    assert out.shape == (B, H)
    assert jnp.allclose(out, ref, atol=1e-4, rtol=1e-4), float(jnp.max(jnp.abs(out - ref)))

    print("KERNEL_OK")
</pallas_src>

<mosaic_0001>
module attributes {stable_mosaic.version = 11 : i64} {
  func.func @_pooler_kernel(%arg0: i32, %arg1: i32, %arg2: memref<8x128xf32, #tpu.memory_space<vmem>>, %arg3: memref<128x128xf32, #tpu.memory_space<vmem>>, %arg4: memref<1x128xf32, #tpu.memory_space<vmem>>, %arg5: memref<8x128xf32, #tpu.memory_space<vmem>>) attributes {dimension_semantics = [#tpu.dimension_semantics<parallel>, #tpu.dimension_semantics<parallel>], iteration_bounds = array<i64: 1, 1>, scalar_prefetch = 0 : i64, scratch_operands = 0 : i64, tpu.core_type = #tpu.core_type<tc>, window_params = [{transform_indices = @transform_0, window_bounds = array<i64: 8, 128>}, {transform_indices = @transform_1, window_bounds = array<i64: 128, 128>}, {transform_indices = @transform_2, window_bounds = array<i64: 1, 128>}, {transform_indices = @transform_3, window_bounds = array<i64: 8, 128>}]} {
    %c0 = arith.constant 0 : index
    %c0_0 = arith.constant 0 : index
    %0 = vector.load %arg2[%c0, %c0_0] : memref<8x128xf32, #tpu.memory_space<vmem>>, vector<8x128xf32>
    %c0_1 = arith.constant 0 : index
    %c0_2 = arith.constant 0 : index
    %1 = vector.load %arg3[%c0_1, %c0_2] : memref<128x128xf32, #tpu.memory_space<vmem>>, vector<128x128xf32>
    %cst = arith.constant dense<0.000000e+00> : vector<8x128xf32>
    %2 = tpu.matmul %0, %1, %cst {dimension_numbers = #tpu.dot_dimension_numbers<[1], [1], [0], [0], [0, 0, 1, 0], [], []>} : vector<8x128xf32>, vector<128x128xf32>, vector<8x128xf32> -> vector<8x128xf32>
    %c0_3 = arith.constant 0 : index
    %c0_4 = arith.constant 0 : index
    %3 = vector.load %arg4[%c0_3, %c0_4] : memref<1x128xf32, #tpu.memory_space<vmem>>, vector<1x128xf32>
    %4 = vector.broadcast %3 : vector<1x128xf32> to vector<8x128xf32>
    %5 = arith.addf %2, %4 : vector<8x128xf32>
    %6 = math.tanh %5 : vector<8x128xf32>
    %c0_5 = arith.constant 0 : index
    %c0_6 = arith.constant 0 : index
    %7 = vector.load %arg5[%c0_5, %c0_6] : memref<8x128xf32, #tpu.memory_space<vmem>>, vector<8x128xf32>
    tpu.vector_store %arg5[%c0_5, %c0_6], %6 {strides = array<i32>} : memref<8x128xf32, #tpu.memory_space<vmem>>, vector<8x128xf32>,
    return
  }
  func.func @transform_0(%arg0: i32, %arg1: i32) -> (i32, i32) {
    %c0_i32 = arith.constant 0 : i32
    %c0_i32_0 = arith.constant 0 : i32
    return %arg1, %c0_i32 : i32, i32
  }
  func.func @transform_1(%arg0: i32, %arg1: i32) -> (i32, i32) {
    %c0_i32 = arith.constant 0 : i32
    %c0_i32_0 = arith.constant 0 : i32
    return %arg0, %c0_i32 : i32, i32
  }
  func.func @transform_2(%arg0: i32, %arg1: i32) -> (i32, i32) {
    %c0_i32 = arith.constant 0 : i32
    %c0_i32_0 = arith.constant 0 : i32
    return %c0_i32, %arg0 : i32, i32
  }
  func.func @transform_3(%arg0: i32, %arg1: i32) -> (i32, i32) {
    %c0_i32 = arith.constant 0 : i32
    return %arg1, %arg0 : i32, i32
  }
}

</mosaic_0001>

<bundles_post_ra>
// kernel: tpu_custom_call.1
= control target key start
LH: loop header
LB: loop body
LE: loop exit
PB: predicated region body
PF: predicated region fallthrough
CT: control target
= control target key end

     0   :  { %8 = vsyncpa [#allocation3], 0  ;;  %s229_s0 = inlined_call_operand.hbm [shape: f32[8,1024], index: 0, kind: input, shape index: {}]   ;;  %s230_s1 = inlined_call_operand.hbm [shape: f32[128,128], index: 1, kind: input, shape index: {}]   ;;  %s231_s2 = inlined_call_operand.vmem [shape: f32[1,128], index: 2, kind: input, shape index: {}]   ;;  %s232_s3 = inlined_call_operand.hbm [shape: f32[8,128], index: 3, kind: output, shape index: {}]  }
   0x1   :  { %9 = vsyncpa [#allocation6], 0 }
   0x2   :  { %10 = vsyncpa [#allocation4], 0  ;;  %s16_s14 = sshll.u32 %s229_s0, 4  ;;  %s192_s15 = smov [#allocation2]   ;;  %s17_s14 = int_to_ptr.hbm [resolvable:$true] %s16_s14 }
   0x3   :  { %s18_s16 = sshll.u32 %s192_s15, 4  ;;  %s26_s19 = sshll.u32 %s230_s1, 4  ;;  %s19_s16 = int_to_ptr.vmem [resolvable:$true] %s18_s16  ;;  %s27_s19 = int_to_ptr.hbm [resolvable:$true] %s26_s19 }
   0x4   :  { %21 = dma.hbm_to_vmem [thread:$0]  %s17_s14, 128, %s19_s16, [#allocation3]  }
   0x5   :  { %s193_s20 = smov [#allocation5]   ;;  %s194_s22 = smov 128  }
   0x6   :  { %s28_s21 = sshll.u32 %s193_s20, 4  ;;  %s195_s23 = smov 8   ;;  %s29_s21 = int_to_ptr.vmem [resolvable:$true] %s28_s21 }
   0x7   :  { %34 = dma.hbm_to_vmem [thread:$0]  %s27_s19, 2048, %s29_s21, [#allocation6], %s194_s22, %s194_s22, %s195_s23  }
   0x8   :  { %186 = dma.done.wait [#allocation3], 128  }
   0x9   :  { %187 = vsyncadd [#allocation3], 4294967168 }
   0xa   :  { %188 = dma.done.wait [#allocation6], 2048  }
   0xb   :  { %189 = vsyncadd [#allocation6], 4294965248  ;;  %v61_v0 = vld [vmem:[#allocation5 + $0x78] sm:$0xff]  ;;  %v60_v1 = vld [vmem:[#allocation5 + $0x70] sm:$0xff]  ;;  %s196_s24 = smov [#allocation7]   ;;  %s95_s28 = sshll.u32 %s232_s3, 4  ;;  %s96_s28 = int_to_ptr.hbm [resolvable:$true] %s95_s28 }
   0xc   :  { %66 = vmatpush.xpose.msra.mxu0 %v61_v0  ;;  %v59_v2 = vld [vmem:[#allocation5 + $0x68] sm:$0xff]  ;;  %v58_v3 = vld [vmem:[#allocation5 + $0x60] sm:$0xff]  ;;  %v57_v4 = vld [vmem:[#allocation5 + $0x58] sm:$0xff]  ;;  %s93_s25 = sshll.u32 %s196_s24, 4  ;;  %s94_s25 = int_to_ptr.vmem [resolvable:$true] %s93_s25 }
   0xd   :  { %v56_v5 = vld [vmem:[#allocation5 + $0x50] sm:$0xff]  ;;  %v55_v6 = vld [vmem:[#allocation5 + $0x48] sm:$0xff]  ;;  %v54_v7 = vld [vmem:[#allocation5 + $0x40] sm:$0xff] }
   0xe   :  { %v53_v8 = vld [vmem:[#allocation5 + $0x38] sm:$0xff]  ;;  %v52_v9 = vld [vmem:[#allocation5 + $0x30] sm:$0xff]  ;;  %v51_v10 = vld [vmem:[#allocation5 + $0x28] sm:$0xff] }
   0xf   :  { %v50_v11 = vld [vmem:[#allocation5 + $0x20] sm:$0xff]  ;;  %v49_v12 = vld [vmem:[#allocation5 + $0x18] sm:$0xff]  ;;  %v48_v13 = vld [vmem:[#allocation5 + $0x10] sm:$0xff] }
  0x10   :  { %67 = vmatpush.xpose.msra.mxu0 %v60_v1  ;;  %v47_v14 = vld [vmem:[#allocation5 + $0x8] sm:$0xff]  ;;  %v46_v15 = vld [vmem:[#allocation5] sm:$0xff]  ;;  %v45_v16 = vld [vmem:[#allocation2] sm:$0xff] }
  0x11   :  { %v111_v17 = vld [vmem:[%s231_s2] ss:$0 sm:$0xff] }
  0x14   :  { %68 = vmatpush.xpose.msra.mxu0 %v59_v2 }
  0x18   :  { %69 = vmatpush.xpose.msra.mxu0 %v58_v3 }
  0x1c   :  { %70 = vmatpush.xpose.msra.mxu0 %v57_v4 }
  0x20   :  { %71 = vmatpush.xpose.msra.mxu0 %v56_v5 }
  0x24   :  { %72 = vmatpush.xpose.msra.mxu0 %v55_v6 }
  0x28   :  { %73 = vmatpush.xpose.msra.mxu0 %v54_v7 }
  0x2c   :  { %74 = vmatpush.xpose.msra.mxu0 %v53_v8 }
  0x30   :  { %75 = vmatpush.xpose.msra.mxu0 %v52_v9 }
  0x34   :  { %76 = vmatpush.xpose.msra.mxu0 %v51_v10 }
  0x38   :  { %77 = vmatpush.xpose.msra.mxu0 %v50_v11 }
  0x3c   :  { %78 = vmatpush.xpose.msra.mxu0 %v49_v12 }
  0x40   :  { %79 = vmatpush.xpose.msra.mxu0 %v48_v13 }
  0x44   :  { %80 = vmatpush.xpose.msra.mxu0 %v47_v14 }
  0x48   :  { %81 = vmatpush.xpose.msra.mxu0 %v46_v15 }
  0x4b   :  { %82 = vmatmul.f32.vlgmr.msra.gmra.mxu0 %v45_v16 }
  0xc8   :  { %v83_v18 = vpop.f32.mrf.mxu0 }
  0xc9   :  { %v84_v19 = vadd.f32 %v111_v17, %v83_v18 }
  0xcb   :  { %112 = vtanh.f32 %v84_v19 }
  0xd1   :  { %v113_v20 = vpop.eup %112 }
  0xd2   :  { %87 = vst [vmem:[#allocation7] sm:$0xff] %v113_v20 }
  0xd3   :  { %98 = dma.vmem_to_hbm [thread:$0]  %s94_s25, 128, %s96_s28, [#allocation4]  }
  0xd4   :  { %190 = dma.done.wait [#allocation4], 128  }
  0xd5   :  { %191 = vsyncadd [#allocation4], 4294967168 }
  0xd6   :  { %103 = vsyncpa [#allocation3], 1 }
  0xd7   :  { %104 = vsyncpa [#allocation6], 1 }
  0xd8   :  { %105 = vsyncpa [#allocation4], 1 }

</bundles_post_ra>
